<compile_context>
chip_gen: v7x
topology: tpu7x:2x2x1
jax: 0.10.0
libtpu: 0.0.40
codegen_flags: <defaults>
</compile_context>

<pallas_src>
import functools

import jax
import jax.numpy as jnp
from jax import lax
from jax.experimental import pallas as pl
from jax.experimental.pallas import tpu as pltpu


def _round_up(x: int, m: int) -> int:
    return ((x + m - 1) // m) * m


def _mse_kernel(p_ref, t_ref, o_ref, acc_ref, *, n_features: int,
                feature_tile: int, mask_features: bool):
    """Grid = (batch_blocks, feature_blocks); feature axis is the reduction."""
    k = pl.program_id(1)

    @pl.when(k == 0)
    def _():
        acc_ref[...] = jnp.zeros_like(acc_ref)

    # Blocks travel in their input dtype; upcast to f32 for the accumulate.
    d = p_ref[...].astype(jnp.float32) - t_ref[...].astype(jnp.float32)
    sq = d * d
    if mask_features:
        # Only needed when the feature tile does not divide N: zero out the
        # padded columns of the (partial) last feature block.  Cheap VPU work,
        # fully hidden under the HBM stream.
        cols = lax.broadcasted_iota(jnp.int32, sq.shape, 1) + k * feature_tile
        sq = jnp.where(cols < n_features, sq, 0.0)
    acc_ref[...] += sq

    @pl.when(k == pl.num_programs(1) - 1)
    def _():
        # One cross-lane reduction + mean per batch block (negligible).
        s = jnp.sum(acc_ref[...], axis=1, keepdims=True)
        o_ref[...] = (s * (1.0 / n_features)).astype(o_ref.dtype)


def weights_mse_loss(predict: jax.Array, target: jax.Array, *,
                     batch_tile: int = 256,
                     feature_tile: int | None = None) -> jax.Array:
    """Per-sample MSE: ((predict - target)**2).mean(axis=1) -> shape (bs,)."""
    assert predict.shape == target.shape, "predict and target must have the same shape"
    assert predict.ndim == 2, "expected inputs of shape (bs, z*x*y)"
    bs, n = predict.shape
    itemsize = predict.dtype.itemsize

    # Batch tile: if the whole batch fits in one tile, use the full dim (a
    # block dim equal to the array dim is always layout-legal, so no padding
    # is ever needed for small/odd batch sizes).  Otherwise tile by a multiple
    # of 8 and let the last block be partial.
    if bs <= batch_tile:
        bt = bs
    else:
        bt = max((batch_tile // 8) * 8, 8)
    bt_phys = _round_up(max(bt, 1), 8)

    # Feature tile: aim for ~2 MiB per input block (per pipeline buffer),
    # lane-aligned (multiple of 128).  If N fits in one tile, use the full dim.
    if feature_tile is None:
        ft = ((2 << 20) // (bt_phys * itemsize)) // 128 * 128
        ft = max(ft, 128)
    else:
        ft = max((feature_tile // 128) * 128, 128)
    if n <= ft:
        ft = n                       # single full-width block, no masking
    mask_features = (n % ft) != 0    # only possible when n > ft

    grid = (pl.cdiv(bs, bt), pl.cdiv(n, ft))

    # VMEM budget: 2 inputs x 2 pipeline buffers x block, plus the f32
    # accumulator, plus headroom.  Stays well under every chip's limit.
    ft_phys = _round_up(ft, 128)
    block_bytes = bt_phys * ft_phys * itemsize
    acc_bytes = bt_phys * ft_phys * 4
    vmem_limit = int(2 * 2 * block_bytes + acc_bytes + (4 << 20))
    vmem_limit = max(vmem_limit, 16 << 20)

    kernel = functools.partial(_mse_kernel, n_features=n, feature_tile=ft,
                               mask_features=mask_features)

    out = pl.pallas_call(
        kernel,
        out_shape=jax.ShapeDtypeStruct((bs, 1), jnp.float32),
        grid_spec=pltpu.PrefetchScalarGridSpec(
            num_scalar_prefetch=0,
            grid=grid,
            in_specs=[
                pl.BlockSpec((bt, ft), lambda b, k: (b, k)),
                pl.BlockSpec((bt, ft), lambda b, k: (b, k)),
            ],
            out_specs=pl.BlockSpec((bt, 1), lambda b, k: (b, 0)),
            scratch_shapes=[pltpu.VMEM((bt, ft), jnp.float32)],
        ),
        compiler_params=pltpu.CompilerParams(
            # Batch blocks are independent (core-shardable); the feature axis
            # is the reduction and must stay sequential.
            dimension_semantics=("parallel", "arbitrary"),
            vmem_limit_bytes=vmem_limit,
        ),
    )(predict, target)

    return out[:, 0]


if __name__ == "__main__":
    key = jax.random.PRNGKey(0)
    k1, k2, k3, k4, k5, k6 = jax.random.split(key, 6)

    # Shapes consistent with the module: (bs, z*x*y)
    bs = 2
    z, x, y = 4, 8, 8            # N = z*x*y = 256
    n = z * x * y
    predict = jax.random.normal(k1, (bs, n), dtype=jnp.float32)
    target = jax.random.normal(k2, (bs, n), dtype=jnp.float32)

    loss = weights_mse_loss(predict, target)
    jax.block_until_ready(loss)
    ref = jnp.mean((predict - target) ** 2, axis=1)
    assert loss.shape == (bs,)
    assert jnp.allclose(loss, ref, rtol=1e-5, atol=1e-6), (loss, ref)

    # Awkward (non-multiple-of-(8,128)) dims: full-dim block path, no padding.
    p2 = jax.random.normal(k3, (3, 300), dtype=jnp.float32)
    t2 = jax.random.normal(k4, (3, 300), dtype=jnp.float32)
    loss2 = weights_mse_loss(p2, t2)
    jax.block_until_ready(loss2)
    ref2 = jnp.mean((p2 - t2) ** 2, axis=1)
    assert loss2.shape == (3,)
    assert jnp.allclose(loss2, ref2, rtol=1e-5, atol=1e-6), (loss2, ref2)

    # Force small tiles: exercises partial edge blocks on both axes and the
    # in-kernel feature-column mask (the generic large-shape code path).
    p3 = jax.random.normal(k5, (10, 300), dtype=jnp.float32)
    t3 = jax.random.normal(k6, (10, 300), dtype=jnp.float32)
    loss3 = weights_mse_loss(p3, t3, batch_tile=8, feature_tile=128)
    jax.block_until_ready(loss3)
    ref3 = jnp.mean((p3 - t3) ** 2, axis=1)
    assert loss3.shape == (10,)
    assert jnp.allclose(loss3, ref3, rtol=1e-5, atol=1e-6), (loss3, ref3)

    print("KERNEL_OK")
</pallas_src>

<mosaic_0001>
module attributes {stable_mosaic.version = 11 : i64} {
  func.func @_mse_kernel(%arg0: i32, %arg1: i32, %arg2: memref<2x256xf32, #tpu.memory_space<vmem>>, %arg3: memref<2x256xf32, #tpu.memory_space<vmem>>, %arg4: memref<2x1xf32, #tpu.memory_space<vmem>>, %arg5: memref<2x256xf32, #tpu.memory_space<vmem>>) attributes {dimension_semantics = [#tpu.dimension_semantics<parallel>, #tpu.dimension_semantics<arbitrary>], iteration_bounds = array<i64: 1, 1>, scalar_prefetch = 0 : i64, scratch_operands = 1 : i64, tpu.core_type = #tpu.core_type<tc>, window_params = [{transform_indices = @transform_0, window_bounds = array<i64: 2, 256>}, {transform_indices = @transform_1, window_bounds = array<i64: 2, 256>}, {transform_indices = @transform_2, window_bounds = array<i64: 2, 1>}]} {
    %c0_i32 = arith.constant 0 : i32
    %0 = arith.cmpi eq, %arg1, %c0_i32 : i32
    %1 = arith.extui %0 : i1 to i32
    %c0_i32_0 = arith.constant 0 : i32
    %2 = arith.cmpi ne, %1, %c0_i32_0 : i32
    scf.if %2 {
      %cst = arith.constant 0.000000e+00 : f32
      %13 = vector.broadcast %cst : f32 to vector<2x256xf32>
      %c0_10 = arith.constant 0 : index
      %c0_11 = arith.constant 0 : index
      %14 = vector.load %arg5[%c0_10, %c0_11] : memref<2x256xf32, #tpu.memory_space<vmem>>, vector<2x256xf32>
      tpu.vector_store %arg5[%c0_10, %c0_11], %13 {strides = array<i32>} : memref<2x256xf32, #tpu.memory_space<vmem>>, vector<2x256xf32>,
    } else {
    }
    %c0 = arith.constant 0 : index
    %c0_1 = arith.constant 0 : index
    %3 = vector.load %arg2[%c0, %c0_1] : memref<2x256xf32, #tpu.memory_space<vmem>>, vector<2x256xf32>
    %c0_2 = arith.constant 0 : index
    %c0_3 = arith.constant 0 : index
    %4 = vector.load %arg3[%c0_2, %c0_3] : memref<2x256xf32, #tpu.memory_space<vmem>>, vector<2x256xf32>
    %5 = arith.subf %3, %4 : vector<2x256xf32>
    %6 = arith.mulf %5, %5 : vector<2x256xf32>
    %c0_4 = arith.constant 0 : index
    %c0_5 = arith.constant 0 : index
    %7 = vector.load %arg5[%c0_4, %c0_5] : memref<2x256xf32, #tpu.memory_space<vmem>>, vector<2x256xf32>
    %8 = arith.addf %7, %6 : vector<2x256xf32>
    %c0_6 = arith.constant 0 : index
    %c0_7 = arith.constant 0 : index
    %9 = vector.load %arg5[%c0_6, %c0_7] : memref<2x256xf32, #tpu.memory_space<vmem>>, vector<2x256xf32>
    tpu.vector_store %arg5[%c0_6, %c0_7], %8 {strides = array<i32>} : memref<2x256xf32, #tpu.memory_space<vmem>>, vector<2x256xf32>,
    %c0_i32_8 = arith.constant 0 : i32
    %10 = arith.cmpi eq, %arg1, %c0_i32_8 : i32
    %11 = arith.extui %10 : i1 to i32
    %c0_i32_9 = arith.constant 0 : i32
    %12 = arith.cmpi ne, %11, %c0_i32_9 : i32
    scf.if %12 {
      %c0_10 = arith.constant 0 : index
      %c0_11 = arith.constant 0 : index
      %13 = vector.load %arg5[%c0_10, %c0_11] : memref<2x256xf32, #tpu.memory_space<vmem>>, vector<2x256xf32>
      %cst = arith.constant dense<0.000000e+00> : vector<2xf32>
      %14 = vector.multi_reduction <add>, %13, %cst [1] : vector<2x256xf32> to vector<2xf32>
      %15 = vector.shape_cast %14 : vector<2xf32> to vector<2x1xf32>
      %cst_12 = arith.constant 3.906250e-03 : f32
      %16 = vector.broadcast %cst_12 : f32 to vector<2x1xf32>
      %17 = arith.mulf %15, %16 : vector<2x1xf32>
      %c0_13 = arith.constant 0 : index
      %c0_14 = arith.constant 0 : index
      %18 = vector.load %arg4[%c0_13, %c0_14] : memref<2x1xf32, #tpu.memory_space<vmem>>, vector<2x1xf32>
      tpu.vector_store %arg4[%c0_13, %c0_14], %17 {strides = array<i32>} : memref<2x1xf32, #tpu.memory_space<vmem>>, vector<2x1xf32>,
    } else {
    }
    return
  }
  func.func @transform_0(%arg0: i32, %arg1: i32) -> (i32, i32) {
    %c0_i32 = arith.constant 0 : i32
    return %arg0, %arg1 : i32, i32
  }
  func.func @transform_1(%arg0: i32, %arg1: i32) -> (i32, i32) {
    %c0_i32 = arith.constant 0 : i32
    return %arg0, %arg1 : i32, i32
  }
  func.func @transform_2(%arg0: i32, %arg1: i32) -> (i32, i32) {
    %c0_i32 = arith.constant 0 : i32
    %c0_i32_0 = arith.constant 0 : i32
    return %arg0, %c0_i32 : i32, i32
  }
}

</mosaic_0001>

<bundles_post_ra>
// kernel: tpu_custom_call.1
= control target key start
LH: loop header
LB: loop body
LE: loop exit
PB: predicated region body
PF: predicated region fallthrough
CT: control target
= control target key end

     0   :  { %7 = vsyncpa [#allocation4], 0  ;;  %s174_s0 = inlined_call_operand.hbm [shape: f32[2,256], index: 0, kind: input, shape index: {}]   ;;  %s175_s1 = inlined_call_operand.hbm [shape: f32[2,256], index: 1, kind: input, shape index: {}]   ;;  %s176_s2 = inlined_call_operand.vmem [shape: f32[2,1], index: 2, kind: output, shape index: {}]  }
   0x1   :  { %8 = vsyncpa [#allocation6], 0  ;;  %s129_s9 = smov [#allocation3]   ;;  %s130_s11 = smov [#allocation5]  }
   0x2   :  { %s15_s10 = sshll.u32 %s129_s9, 4  ;;  %s25_s12 = sshll.u32 %s130_s11, 4  ;;  %s16_s10 = int_to_ptr.vmem [resolvable:$true] %s15_s10  ;;  %s26_s12 = int_to_ptr.vmem [resolvable:$true] %s25_s12 }
   0x3   :  { %s81_s15 = scalar_lea.hbm %s174_s0, 64 }
   0x4   :  { %p82_p0 = scmp.ne.s32.totalorder %s174_s0, %s81_s15  ;;  %p85_p1 = scmp.lt.u32.totalorder %s81_s15, %s174_s0 }
   0x6   :  { %p87_p2 = pnand %p85_p1, %p82_p0 }
   0x8   :  { %90 = shalt.err (!%p87_p2)
}
   0x9   :  { %s91_s20 = scalar_lea.vmem %s16_s10, 64  ;;  %p96_p4 = scmp.lt.s32.totalorder %s16_s10, %s16_s10 }
   0xa   :  { %p92_p3 = scmp.ne.s32.totalorder %s16_s10, %s91_s20  ;;  %p97_p5 = scmp.lt.s32.totalorder %s91_s20, %s91_s20 }
   0xc   :  { %p98_p6 = por %p97_p5, %p96_p4 }
   0xe   :  { %p99_p7 = pnand %p98_p6, %p92_p3 }
  0x10   :  { %102 = shalt.err (!%p99_p7)
}
  0x11   :  { %18 = dma.hbm_to_vmem [thread:$0]  %s174_s0, 64, %s16_s10, [#allocation4]  }
  0x12   :  { %s103_s25 = scalar_lea.hbm %s175_s1, 64 }
  0x13   :  { %p104_p8 = scmp.ne.s32.totalorder %s175_s1, %s103_s25  ;;  %p107_p9 = scmp.lt.u32.totalorder %s103_s25, %s175_s1 }
  0x15   :  { %p109_p10 = pnand %p107_p9, %p104_p8 }
  0x17   :  { %112 = shalt.err (!%p109_p10)
}
  0x18   :  { %s113_s30 = scalar_lea.vmem %s26_s12, 64  ;;  %p118_p12 = scmp.lt.s32.totalorder %s26_s12, %s26_s12 }
  0x19   :  { %p114_p11 = scmp.ne.s32.totalorder %s26_s12, %s113_s30  ;;  %p119_p13 = scmp.lt.s32.totalorder %s113_s30, %s113_s30 }
  0x1b   :  { %p120_p0 = por %p119_p13, %p118_p12 }
  0x1d   :  { %p121_p1 = pnand %p120_p0, %p114_p11 }
  0x1f   :  { %124 = shalt.err (!%p121_p1)
}
  0x20   :  { %28 = dma.hbm_to_vmem [thread:$0]  %s175_s1, 64, %s26_s12, [#allocation6]  }
  0x21   :  { %125 = dma.done.wait [#allocation4], 64  }
  0x22   :  { %126 = vsyncadd [#allocation4], 4294967232 }
  0x23   :  { %127 = dma.done.wait [#allocation6], 64  }
  0x24   :  { %128 = vsyncadd [#allocation6], 4294967232  ;;  %v131_v0 = vmov 0.0   ;;  %v40_v1 = vld [vmem:[#allocation3] sm:$0xf]  ;;  %vm62_vm0 = vcmask 1041408  }
  0x25   :  { %39 = vst [vmem:[#allocation2] sm:$0xf] %v131_v0  ;;  %v41_v2 = vld [vmem:[#allocation5] sm:$0xf]  ;;  %vm69_vm1 = vcmask 1024  }
  0x26   :  { %v42_v3 = vsub.f32 %v40_v1, %v41_v2 }
  0x28   :  { %v43_v5 = vmul.f32 %v42_v3, %v42_v3 }
  0x2c   :  { %v44_v4 = vld [vmem:[#allocation2] sm:$0xf] }
  0x2d   :  { %v45_v6 = vadd.f32 %v44_v4, %v43_v5 }
  0x2f   :  { %46 = vst [vmem:[#allocation2] sm:$0xf] %v45_v6 }
  0x36   :  { %v77_v7 = vld.sshfl [vmem:[#allocation2] sm:$0x33 pattern:$0x76325410] }
  0x37   :  { %v59_v8 = vcombine.high %v77_v7, %v77_v7  ;;  %v63_v9 = vsel %vm62_vm0, %v77_v7, 0.0 }
  0x39   :  { %v64_v10 = vsel %vm62_vm0, %v59_v8, 0.0 }
  0x3a   :  { %v65_v11 = vadd.f32 %v64_v10, %v63_v9 }
  0x3c   :  { %66 = vadd.xlane.f32.xlu0 %v65_v11 }
  0xc9   :  { %v67_v12 = vpop.xlane.xlu0 %66 }
  0xca   :  { %v68_v13 = vmul.f32 0.00390625, %v67_v12 }
  0xcc   :  { %70 = vst.msk [vmem:[%s176_s2] sm:$0x3] %vm69_vm1, %v68_v13 }
  0xcd   :  { %75 = vsyncpa [#allocation4], 1 }
  0xce   :  { %76 = vsyncpa [#allocation6], 1 }

</bundles_post_ra>
